<compile_context>
chip_gen: v6e
topology: v6e:2x2x1
jax: 0.10.0
libtpu: 0.0.40
codegen_flags: <defaults>
</compile_context>

<pallas_src>
import math

import jax
import jax.numpy as jnp
from jax.experimental import pallas as pl
from jax.experimental.pallas import tpu as pltpu

_LANE_WIDTH = 1024       # lane-dense slab width (multiple of 128)
_MAX_BLOCK_ROWS = 1024   # (1024, 1024) f32 block = 4 MiB per input per buffer
_VMEM_LIMIT = 40 << 20   # 2 inputs x 2 buffers x 4 MiB (f32) + headroom; safe on v5e/v6e/v7x


def _stable_bce(x, t):
    x = x.astype(jnp.float32)
    t = t.astype(jnp.float32)
    return jnp.maximum(x, 0.0) - x * t + jnp.log1p(jnp.exp(-jnp.abs(x)))


def _make_bce_kernel(rows, tr, tc, needs_mask):
    """Build a kernel writing per-tile partial sums of the stable BCE loss."""

    if tr % 8 != 0:
        # Small case: a single block equal to the full (rows, tc) array (rows <= 8),
        # no masking and no group loop needed.
        def kernel(x_ref, t_ref, o_ref):
            o_ref[...] = _stable_bce(x_ref[...], t_ref[...])
        return kernel

    n_groups = tr // 8

    def kernel(x_ref, t_ref, o_ref):
        if needs_mask:
            # Hoisted out of the loop: sublane-index iota and this tile's valid-row
            # count (compare+select per group is free under the mem-bound regime).
            row_iota = jax.lax.broadcasted_iota(jnp.int32, (8, tc), 0)
            limit = rows - pl.program_id(0) * tr

        def body(g, acc):
            r = pl.multiple_of(g * 8, 8)
            loss = _stable_bce(x_ref[pl.ds(r, 8), :], t_ref[pl.ds(r, 8), :])
            if needs_mask:
                loss = jnp.where(row_iota < (limit - g * 8), loss, 0.0)
            return acc + loss

        # Bounded-unroll fori keeps vreg live ranges flat at large tile sizes
        # while retaining LLO scheduling visibility.
        o_ref[...] = jax.lax.fori_loop(
            0, n_groups, body, jnp.zeros((8, tc), jnp.float32), unroll=4)

    return kernel


def _round_down(a: int, b: int) -> int:
    return (a // b) * b


def bce_with_logits_loss(logits, target):
    """Mean BCEWithLogitsLoss over all elements; matches nn.BCEWithLogitsLoss()."""
    assert logits.shape == target.shape
    total = math.prod(logits.shape) if logits.shape else 1
    tc = _LANE_WIDTH

    x = logits.reshape(-1)
    t = target.reshape(-1)
    # Stream native narrow floating dtypes (f32/bf16/f16) straight from HBM;
    # only bool/int targets or f64 inputs get a wrapper-side cast.
    if not jnp.issubdtype(x.dtype, jnp.floating) or x.dtype == jnp.float64:
        x = x.astype(jnp.float32)
    if not jnp.issubdtype(t.dtype, jnp.floating) or t.dtype == jnp.float64:
        t = t.astype(jnp.float32)

    rows = total // tc          # full lane-width rows handled by the kernel
    main = rows * tc
    tail = total - main         # <1024-element ragged remainder (plain JAX)

    loss_sum = jnp.zeros((), jnp.float32)

    if rows > 0:
        if rows <= 8:
            tr = rows                                     # exact single block
        else:
            tr = min(_MAX_BLOCK_ROWS, _round_down(rows, 8))
        num_tiles = -(-rows // tr)
        needs_mask = (rows % tr) != 0                     # ragged last row block
        out_rows = 8 if tr % 8 == 0 else tr

        x2 = x[:main].reshape(rows, tc)                   # zero-copy prefix view
        t2 = t[:main].reshape(rows, tc)

        in_bytes = x2.dtype.itemsize + t2.dtype.itemsize
        partials = pl.pallas_call(
            _make_bce_kernel(rows, tr, tc, needs_mask),
            out_shape=jax.ShapeDtypeStruct((out_rows * num_tiles, tc), jnp.float32),
            grid_spec=pltpu.PrefetchScalarGridSpec(
                num_scalar_prefetch=0,
                grid=(num_tiles,),
                in_specs=[
                    pl.BlockSpec((tr, tc), lambda i: (i, 0)),
                    pl.BlockSpec((tr, tc), lambda i: (i, 0)),
                ],
                out_specs=pl.BlockSpec((out_rows, tc), lambda i: (i, 0)),
            ),
            compiler_params=pltpu.CompilerParams(
                # Row tiles are independent -> shards across both TensorCores on
                # v7x; harmless (sequential) on single-TC v5e/v6e.
                dimension_semantics=("parallel",),
                vmem_limit_bytes=_VMEM_LIMIT,
            ),
            cost_estimate=pl.CostEstimate(
                flops=6 * main,
                transcendentals=2 * main,
                bytes_accessed=in_bytes * main + 4 * out_rows * num_tiles * tc,
            ),
        )(x2, t2)
        loss_sum = loss_sum + jnp.sum(partials)

    if tail > 0:
        # Sub-1024-element remainder: plain JAX, avoids any pad/concat copy.
        loss_sum = loss_sum + jnp.sum(_stable_bce(x[main:], t[main:]))

    return loss_sum / jnp.float32(total)


if __name__ == "__main__":
    key = jax.random.PRNGKey(0)
    k1, k2 = jax.random.split(key)

    # Small NCHW inputs consistent with a segmentation-style BCE loss.
    x = jax.random.normal(k1, (2, 4, 16, 16), dtype=jnp.float32)             # logits
    t = (jax.random.uniform(k2, (2, 4, 16, 16)) > 0.5).astype(jnp.float32)   # targets in {0,1}

    loss = bce_with_logits_loss(x, t)
    jax.block_until_ready(loss)

    ref = jnp.mean(jnp.maximum(x, 0.0) - x * t + jnp.log1p(jnp.exp(-jnp.abs(x))))
    assert jnp.allclose(loss, ref, rtol=1e-5, atol=1e-6), (loss, ref)

    # Also exercise the multi-tile / ragged-row / plain-JAX-tail path.
    k3, k4 = jax.random.split(k2)
    x2 = jax.random.normal(k3, (3, 7, 33, 16), dtype=jnp.float32)
    t2 = (jax.random.uniform(k4, (3, 7, 33, 16)) > 0.5).astype(jnp.float32)
    loss2 = bce_with_logits_loss(x2, t2)
    jax.block_until_ready(loss2)
    ref2 = jnp.mean(jnp.maximum(x2, 0.0) - x2 * t2 + jnp.log1p(jnp.exp(-jnp.abs(x2))))
    assert jnp.allclose(loss2, ref2, rtol=1e-5, atol=1e-6), (loss2, ref2)

    print("KERNEL_OK")
</pallas_src>

<mosaic_0001>
module attributes {stable_mosaic.version = 11 : i64} {
  func.func @kernel(%arg0: i32, %arg1: memref<2x1024xf32, #tpu.memory_space<vmem>>, %arg2: memref<2x1024xf32, #tpu.memory_space<vmem>>, %arg3: memref<2x1024xf32, #tpu.memory_space<vmem>>) attributes {dimension_semantics = [#tpu.dimension_semantics<parallel>], iteration_bounds = array<i64: 1>, scalar_prefetch = 0 : i64, scratch_operands = 0 : i64, tpu.core_type = #tpu.core_type<tc>, window_params = [{transform_indices = @transform_0, window_bounds = array<i64: 2, 1024>}, {transform_indices = @transform_1, window_bounds = array<i64: 2, 1024>}, {transform_indices = @transform_2, window_bounds = array<i64: 2, 1024>}]} {
    %c0 = arith.constant 0 : index
    %c0_0 = arith.constant 0 : index
    %0 = vector.load %arg1[%c0, %c0_0] : memref<2x1024xf32, #tpu.memory_space<vmem>>, vector<2x1024xf32>
    %c0_1 = arith.constant 0 : index
    %c0_2 = arith.constant 0 : index
    %1 = vector.load %arg2[%c0_1, %c0_2] : memref<2x1024xf32, #tpu.memory_space<vmem>>, vector<2x1024xf32>
    %cst = arith.constant 0.000000e+00 : f32
    %2 = vector.broadcast %cst : f32 to vector<2x1024xf32>
    %3 = arith.maximumf %0, %2 : vector<2x1024xf32>
    %4 = arith.mulf %0, %1 : vector<2x1024xf32>
    %5 = arith.subf %3, %4 : vector<2x1024xf32>
    %6 = math.absf %0 : vector<2x1024xf32>
    %cst_3 = arith.constant 0.000000e+00 : f32
    %7 = vector.broadcast %cst_3 : f32 to vector<2x1024xf32>
    %8 = arith.subf %7, %6 : vector<2x1024xf32>
    %9 = math.exp %8 : vector<2x1024xf32>
    %10 = math.log1p %9 : vector<2x1024xf32>
    %11 = arith.addf %5, %10 : vector<2x1024xf32>
    %c0_4 = arith.constant 0 : index
    %c0_5 = arith.constant 0 : index
    %12 = vector.load %arg3[%c0_4, %c0_5] : memref<2x1024xf32, #tpu.memory_space<vmem>>, vector<2x1024xf32>
    tpu.vector_store %arg3[%c0_4, %c0_5], %11 {strides = array<i32>} : memref<2x1024xf32, #tpu.memory_space<vmem>>, vector<2x1024xf32>,
    return
  }
  func.func @transform_0(%arg0: i32) -> (i32, i32) {
    %c0_i32 = arith.constant 0 : i32
    %c0_i32_0 = arith.constant 0 : i32
    return %arg0, %c0_i32 : i32, i32
  }
  func.func @transform_1(%arg0: i32) -> (i32, i32) {
    %c0_i32 = arith.constant 0 : i32
    %c0_i32_0 = arith.constant 0 : i32
    return %arg0, %c0_i32 : i32, i32
  }
  func.func @transform_2(%arg0: i32) -> (i32, i32) {
    %c0_i32 = arith.constant 0 : i32
    %c0_i32_0 = arith.constant 0 : i32
    return %arg0, %c0_i32 : i32, i32
  }
}

</mosaic_0001>

<bundles_post_ra>
// kernel: tpu_custom_call.1
= control target key start
LH: loop header
LB: loop body
LE: loop exit
PB: predicated region body
PF: predicated region fallthrough
CT: control target
= control target key end

     0   :  { %7 = vsyncpa [#allocation3], 0  ;;  %s196_s0 = inlined_call_operand.hbm [shape: f32[2,1024], index: 0, kind: input, shape index: {}]   ;;  %s197_s1 = inlined_call_operand.hbm [shape: f32[2,1024], index: 1, kind: input, shape index: {}]   ;;  %s198_s2 = inlined_call_operand.hbm [shape: f32[2,1024], index: 2, kind: output, shape index: {}]  }
   0x1   :  { %8 = vsyncpa [#allocation6], 0 }
   0x2   :  { %9 = vsyncpa [#allocation4], 0  ;;  %s169_s9 = smov [#allocation2]   ;;  %s170_s11 = smov [#allocation5]  }
   0x3   :  { %s16_s10 = sshll.u32 %s169_s9, 4  ;;  %s26_s12 = sshll.u32 %s170_s11, 4  ;;  %s17_s10 = int_to_ptr.vmem [resolvable:$true] %s16_s10  ;;  %s27_s12 = int_to_ptr.vmem [resolvable:$true] %s26_s12 }
   0x4   :  { %s111_s13 = scalar_lea.vmem %s17_s10, 256  ;;  %p116_p1 = scmp.lt.s32.totalorder %s17_s10, %s17_s10 }
   0x5   :  { %p112_p0 = scmp.ne.s32.totalorder %s17_s10, %s111_s13  ;;  %p117_p2 = scmp.lt.s32.totalorder %s111_s13, %s111_s13 }
   0x7   :  { %p118_p3 = por %p117_p2, %p116_p1 }
   0x9   :  { %p119_p4 = pnand %p118_p3, %p112_p0 }
   0xb   :  { %122 = shalt.err (!%p119_p4)
}
   0xc   :  { %19 = dma.hbm_to_vmem [thread:$0]  %s196_s0, 256, %s17_s10, [#allocation3]  }
   0xd   :  { %s131_s16 = scalar_lea.vmem %s27_s12, 256  ;;  %p136_p6 = scmp.lt.s32.totalorder %s27_s12, %s27_s12 }
   0xe   :  { %p132_p5 = scmp.ne.s32.totalorder %s27_s12, %s131_s16  ;;  %p137_p7 = scmp.lt.s32.totalorder %s131_s16, %s131_s16 }
  0x10   :  { %p138_p8 = por %p137_p7, %p136_p6 }
  0x12   :  { %p139_p9 = pnand %p138_p8, %p132_p5 }
  0x14   :  { %142 = shalt.err (!%p139_p9)
}
  0x15   :  { %29 = dma.hbm_to_vmem [thread:$0]  %s197_s1, 256, %s27_s12, [#allocation6]  }
  0x16   :  { %163 = dma.done.wait [#allocation3], 256  }
  0x17   :  { %164 = vsyncadd [#allocation3], 4294967040 }
  0x18   :  { %165 = dma.done.wait [#allocation6], 256  }
  0x19   :  { %166 = vsyncadd [#allocation6], 4294967040  ;;  %v36_v0 = vld [vmem:[#allocation2] sm:$0xff]  ;;  %v37_v1 = vld [vmem:[#allocation2 + $0x8] sm:$0xff]  ;;  %s171_s0 = smov [#allocation7]  }
  0x1a   :  { %v46_v2 = vand.u32 2147483647, %v36_v0  ;;  %v47_v3 = vand.u32 2147483647, %v37_v1  ;;  %v38_v14 = vld [vmem:[#allocation5] sm:$0xff]  ;;  %v39_v15 = vld [vmem:[#allocation5 + $0x8] sm:$0xff] }
  0x1b   :  { %v40_v17 = vmax.f32 %v36_v0, 0.0  ;;  %v42_v18 = vmul.f32 %v38_v14, %v36_v0  ;;  %v41_v21 = vmax.f32 %v37_v1, 0.0  ;;  %v43_v22 = vmul.f32 %v39_v15, %v37_v1  ;;  %s82_s1 = sshll.u32 %s171_s0, 4  ;;  %s83_s1 = int_to_ptr.vmem [resolvable:$true] %s82_s1 }
  0x1c   :  { %v48_v4 = vsub.f32 0.0, %v46_v2  ;;  %v49_v5 = vsub.f32 0.0, %v47_v3  ;;  %s143_s19 = scalar_lea.vmem %s83_s1, 256  ;;  %p148_p11 = scmp.lt.s32.totalorder %s83_s1, %s83_s1 }
  0x1d   :  { %v44_v26 = vsub.f32 %v40_v17, %v42_v18  ;;  %v45_v30 = vsub.f32 %v41_v21, %v43_v22  ;;  %p144_p10 = scmp.ne.s32.totalorder %s83_s1, %s143_s19  ;;  %p149_p12 = scmp.lt.s32.totalorder %s143_s19, %s143_s19 }
  0x1e   :  { %v50_v6 = vmul.f32 1.442695, %v48_v4  ;;  %v52_v7 = vmul.f32 1.442695, %v49_v5 }
  0x1f   :  { %p150_p13 = por %p149_p12, %p148_p11 }
  0x20   :  { %95 = vpow2.f32 %v50_v6 }
  0x21   :  { %97 = vpow2.f32 %v52_v7  ;;  %p151_p0 = pnand %p150_p13, %p144_p10 }
  0x2d   :  { %v96_v8 = vpop.eup %95 }
  0x2e   :  { %v98_v9 = vpop.eup %97  ;;  %v54_v10 = vadd.f32 1.0, %v96_v8  ;;  %v57_v12 = vmul.f32 -0.5, %v96_v8  ;;  %v60_v19 = vand.u32 2147483647, %v96_v8 }
  0x2f   :  { %v63_v11 = vadd.f32 1.0, %v98_v9  ;;  %v66_v13 = vmul.f32 -0.5, %v98_v9  ;;  %v69_v23 = vand.u32 2147483647, %v98_v9 }
  0x30   :  { %99 = vlog2.f32 %v54_v10  ;;  %v58_v16 = vadd.f32 1.0, %v57_v12  ;;  %vm61_vm0 = vcmp.lt.f32.partialorder %v60_v19, 0.0004427343 }
  0x31   :  { %101 = vlog2.f32 %v63_v11  ;;  %v67_v20 = vadd.f32 1.0, %v66_v13  ;;  %vm70_vm1 = vcmp.lt.f32.partialorder %v69_v23, 0.0004427343 }
  0x32   :  { %v59_v24 = vmul.f32 %v96_v8, %v58_v16 }
  0x33   :  { %v68_v27 = vmul.f32 %v98_v9, %v67_v20 }
  0x3d   :  { %v100_v25 = vpop.eup %99 }
  0x3e   :  { %v102_v28 = vpop.eup %101  ;;  %v56_v29 = vmul.f32 0.6931472, %v100_v25 }
  0x3f   :  { %v65_v31 = vmul.f32 0.6931472, %v102_v28 }
  0x40   :  { %v62_v32 = vsel %vm61_vm0, %v59_v24, %v56_v29 }
  0x41   :  { %v72_v33 = vadd.f32 %v62_v32, %v44_v26  ;;  %v71_v34 = vsel %vm70_vm1, %v68_v27, %v65_v31 }
  0x42   :  { %v73_v35 = vadd.f32 %v71_v34, %v45_v30 }
  0x43   :  { %74 = vst [vmem:[#allocation7] sm:$0xff] %v72_v33 }
  0x44   :  { %75 = vst [vmem:[#allocation7 + $0x8] sm:$0xff] %v73_v35 }
  0x45   :  { %154 = shalt.err (!%p151_p0)
}
  0x46   :  { %85 = dma.vmem_to_hbm [thread:$0]  %s83_s1, 256, %s198_s2, [#allocation4]  }
  0x47   :  { %167 = dma.done.wait [#allocation4], 256  }
  0x48   :  { %168 = vsyncadd [#allocation4], 4294967040 }
  0x49   :  { %89 = vsyncpa [#allocation3], 1 }
  0x4a   :  { %90 = vsyncpa [#allocation6], 1 }
  0x4b   :  { %91 = vsyncpa [#allocation4], 1 }

</bundles_post_ra>
